<compile_context>
chip_gen: v5e
topology: v5e:2x2
jax: 0.10.0
libtpu: 0.0.40
codegen_flags: <defaults>
</compile_context>

<pallas_src>
import functools

import jax
import jax.numpy as jnp
from jax.experimental import pallas as pl
from jax.experimental.pallas import tpu as pltpu


_F32_MIN = float(jnp.finfo(jnp.float32).min)   # "-inf" stand-in (no inf-inf NaN)
_PAD_BIAS = -1e30                              # bias for padded vocab columns


def _round_up(x, m):
    return (x + m - 1) // m * m


def _cdiv(a, b):
    return (a + b - 1) // b


def _mask_lm_kernel(x_ref, w_ref, b_ref, out_ref, m_sc, l_sc, *, nv, tv):
    """One (M-tile, V-tile) grid step of fused Linear + online log-softmax.

    x_ref  : (tm, H)  f32  activation tile (resident across the V axis)
    w_ref  : (H, tv)  f32  streamed weight tile
    b_ref  : (1, tv)  f32  streamed bias tile
    out_ref: (tm, Vp) f32  output block, resident across the V axis
    m_sc   : (tm, 1)  f32  running row max
    l_sc   : (tm, 1)  f32  running sum of exp(logits - m)
    """
    j = pl.program_id(1)

    @pl.when(j == 0)
    def _():
        m_sc[...] = jnp.full(m_sc.shape, _F32_MIN, m_sc.dtype)
        l_sc[...] = jnp.zeros(l_sc.shape, l_sc.dtype)

    # Partial logits for this vocab tile: bf16 MXU inputs with f32
    # accumulation; the casts are per-tile VPU work hidden under DMA/MXU.
    s = jnp.dot(x_ref[...].astype(jnp.bfloat16),
                w_ref[...].astype(jnp.bfloat16),
                preferred_element_type=jnp.float32)
    s = s + b_ref[...]                                           # (tm, tv) f32

    # Online log-sum-exp update (numerically stable across V tiles).
    m_prev = m_sc[...]
    m_new = jnp.maximum(m_prev, jnp.max(s, axis=-1, keepdims=True))
    l_sc[...] = (l_sc[...] * jnp.exp(m_prev - m_new)
                 + jnp.sum(jnp.exp(s - m_new), axis=-1, keepdims=True))
    m_sc[...] = m_new

    # Stash raw logits into this V tile's slice of the resident output block.
    # nv is small and static, so unrolled pl.when blocks keep every store a
    # static, 128-aligned, lane-dense slice (no dynamic minormost-dim store).
    for k in range(nv):
        @pl.when(j == k)
        def _(k=k):
            out_ref[:, k * tv:(k + 1) * tv] = s

    # Last V tile: normalize the whole resident row block in place.  The HBM
    # writeback happens once, when the M-tile index advances.
    @pl.when(j == nv - 1)
    def _():
        out_ref[...] = out_ref[...] - (m_sc[...] + jnp.log(l_sc[...]))


def _vmem_budget_bytes():
    """~85% of per-core physical VMEM: ~54 MiB on v7x, ~109 MiB on v5e/v6e.

    Leaves headroom for compiler-internal scratch/semaphores instead of
    requesting full physical capacity (important on v7x's 64 MiB parts).
    """
    phys = 64 << 20                       # conservative default (v7x-sized)
    try:
        phys = int(pltpu.get_tpu_info().vmem_capacity_bytes)
    except Exception:                     # pragma: no cover - query unavailable
        pass
    return max(32 << 20, int(phys * 0.85))


def _choose_tiles(M, H, V, budget):
    """Pick (tm, tv, Vp, vmem_limit) for the fused kernel from the VMEM budget."""
    # Vocab tile: full V when small; otherwise a multiple of 256 (matches the
    # v6e/v7x 256-wide MXU, keeps stores lane-dense on v5e).  The vocab axis
    # is padded to a multiple of tv; padded columns get a huge negative bias.
    if V <= 2048:
        tv, Vp = V, V
    else:
        tv = 2048
        Vp = _round_up(V, tv)

    dbl = 2                                             # double-buffered
    fixed = dbl * (H * tv + 8 * tv) * 4 + (2 << 20)     # W + bias tiles + headroom
    per_row = dbl * (H + Vp + 128) * 4                  # x + out tiles + m/l scratch
    tm = (max(budget - fixed, 0) // per_row) // 8 * 8
    tm = max(8, min(512, _round_up(M, 8), tm))

    # v7x has 2 TensorCores: give the "parallel" M axis >= 2 steps once the
    # problem is big enough to be worth splitting (no-op for the tiny demo).
    if M > 256 and _cdiv(M, tm) == 1:
        tm = max(8, _round_up(_cdiv(M, 2), 8))

    need = fixed + tm * per_row
    vmem_limit = int(min(budget, max(need, 32 << 20)))
    return tm, tv, Vp, vmem_limit


@functools.partial(jax.jit, static_argnames=("tm", "tv", "vmem_limit"))
def _masked_log_model_call(x2d, w2d, b2d, *, tm, tv, vmem_limit):
    """x2d: [M, H] f32, w2d: [H, Vp] f32, b2d: [1, Vp] f32 -> [M, Vp] f32."""
    M, H = x2d.shape
    Vp = w2d.shape[1]
    nv = Vp // tv
    grid = (_cdiv(M, tm), nv)

    kernel = functools.partial(_mask_lm_kernel, nv=nv, tv=tv)
    return pl.pallas_call(
        kernel,
        out_shape=jax.ShapeDtypeStruct((M, Vp), jnp.float32),
        grid_spec=pltpu.PrefetchScalarGridSpec(
            num_scalar_prefetch=0,
            grid=grid,
            in_specs=[
                # Activation tile: f32 in (cast to bf16 in-kernel), resident
                # across the inner V axis; ragged last M tile handled by
                # Pallas boundary clipping (no wrapper-side pad/slice).
                pl.BlockSpec((tm, H), lambda i, j: (i, 0)),
                # Weight / bias: streamed along the V axis (never fully
                # VMEM-resident -> fits production vocab on v7x).
                pl.BlockSpec((H, tv), lambda i, j: (0, j)),
                pl.BlockSpec((1, tv), lambda i, j: (0, j)),
            ],
            # Output block spans the whole (padded) vocab, stays resident in
            # VMEM across the V axis and is written back once per M tile
            # (lane-dense: last dim is a large multiple of 128).
            out_specs=pl.BlockSpec((tm, Vp), lambda i, j: (i, 0)),
            scratch_shapes=[
                pltpu.VMEM((tm, 1), jnp.float32),    # running row max
                pltpu.VMEM((tm, 1), jnp.float32),    # running sum of exp
            ],
        ),
        compiler_params=pltpu.CompilerParams(
            dimension_semantics=("parallel", "arbitrary"),
            vmem_limit_bytes=vmem_limit,
        ),
    )(x2d, w2d, b2d)


def masked_log_model(x2d, w, b):
    """MaskedLogModel forward: log_softmax(x2d @ w + b, axis=-1).

    x2d: [M, H], w: [H, V], b: [V] -> [M, V] f32 log-probabilities.
    The matmul runs in bf16 on the MXU with f32 accumulation (cast in-kernel);
    bias add and the log-softmax stay in f32.
    """
    M, H = x2d.shape
    V = w.shape[1]
    tm, tv, Vp, vmem_limit = _choose_tiles(M, H, V, _vmem_budget_bytes())

    w2d = w.astype(jnp.float32)
    b2d = b.reshape(1, V).astype(jnp.float32)
    if Vp != V:
        # Pad the vocab axis so tv divides it; padded columns carry a huge
        # negative bias (zero weight in the log-sum-exp) and are sliced off.
        w2d = jnp.pad(w2d, ((0, 0), (0, Vp - V)))
        b2d = jnp.pad(b2d, ((0, 0), (0, Vp - V)), constant_values=_PAD_BIAS)

    out = _masked_log_model_call(x2d.astype(jnp.float32), w2d, b2d,
                                 tm=tm, tv=tv, vmem_limit=vmem_limit)
    return out[:, :V] if Vp != V else out


def bertlog_forward(x, mask_lm_w, mask_lm_b):
    """BERTLog.forward semantics (BERT backbone output `x` given directly).

    x: [B, S, H] float32 hidden states from the BERT backbone.
    Returns the result dict with:
      logkey_output: [B, S, V] log-probabilities (MaskedLogModel)
      cls_output:    [B, H]    x[:, 0]
      time_output / cls_fnn_output: None (never set in forward)
    """
    B, S, H = x.shape
    V = mask_lm_w.shape[1]
    x2d = x.reshape(B * S, H)
    logkey = masked_log_model(x2d, mask_lm_w, mask_lm_b).reshape(B, S, V)
    return {
        "logkey_output": logkey,
        "time_output": None,
        "cls_output": x[:, 0],
        "cls_fnn_output": None,
    }


if __name__ == "__main__":
    # Small demo shapes consistent with the module: hidden=32, vocab=128,
    # batch=2, seq=8.  NOTE: these shapes are launch/overhead dominated
    # (single grid step, MXU contraction dim only 32) -- do not tune tm/tv
    # or profile from them.
    B, S, H, V = 2, 8, 32, 128

    key = jax.random.PRNGKey(0)
    kx, kw, kb = jax.random.split(key, 3)

    # Deterministic synthetic "BERT output" and MaskedLogModel parameters
    # (nn.Linear(hidden, vocab_size): weight [V, H] in torch -> stored [H, V]).
    x = jax.random.normal(kx, (B, S, H), dtype=jnp.float32)
    bound = 1.0 / (H ** 0.5)
    mask_lm_w = jax.random.uniform(kw, (H, V), jnp.float32, -bound, bound)
    mask_lm_b = jax.random.uniform(kb, (V,), jnp.float32, -bound, bound)

    result = bertlog_forward(x, mask_lm_w, mask_lm_b)
    jax.block_until_ready(result["logkey_output"])
    jax.block_until_ready(result["cls_output"])

    # Reference 1: same bf16-rounded matmul inputs the kernel sees (tight tol).
    xb = x.reshape(B * S, H).astype(jnp.bfloat16).astype(jnp.float32)
    wb = mask_lm_w.astype(jnp.bfloat16).astype(jnp.float32)
    ref_bf16 = jax.nn.log_softmax(xb @ wb + mask_lm_b, axis=-1).reshape(B, S, V)
    assert jnp.allclose(result["logkey_output"], ref_bf16, atol=1e-3, rtol=1e-3)

    # Reference 2: pure-f32 module semantics (looser tolerance for bf16 matmul).
    ref_f32 = jax.nn.log_softmax(
        x.reshape(B * S, H) @ mask_lm_w + mask_lm_b, axis=-1
    ).reshape(B, S, V)
    assert jnp.allclose(result["logkey_output"], ref_f32, atol=3e-2, rtol=3e-2)

    assert jnp.array_equal(result["cls_output"], x[:, 0])
    assert result["time_output"] is None and result["cls_fnn_output"] is None

    print("KERNEL_OK")
</pallas_src>

<mosaic_0001>
module attributes {stable_mosaic.version = 11 : i64} {
  func.func @_mask_lm_kernel(%arg0: i32, %arg1: i32, %arg2: memref<16x32xf32, #tpu.memory_space<vmem>>, %arg3: memref<32x128xf32, #tpu.memory_space<vmem>>, %arg4: memref<1x128xf32, #tpu.memory_space<vmem>>, %arg5: memref<16x128xf32, #tpu.memory_space<vmem>>, %arg6: memref<16x1xf32, #tpu.memory_space<vmem>>, %arg7: memref<16x1xf32, #tpu.memory_space<vmem>>) attributes {dimension_semantics = [#tpu.dimension_semantics<parallel>, #tpu.dimension_semantics<arbitrary>], iteration_bounds = array<i64: 1, 1>, scalar_prefetch = 0 : i64, scratch_operands = 2 : i64, tpu.core_type = #tpu.core_type<tc>, window_params = [{transform_indices = @transform_0, window_bounds = array<i64: 16, 32>}, {transform_indices = @transform_1, window_bounds = array<i64: 32, 128>}, {transform_indices = @transform_2, window_bounds = array<i64: 1, 128>}, {transform_indices = @transform_3, window_bounds = array<i64: 16, 128>}]} {
    %c0_i32 = arith.constant 0 : i32
    %0 = arith.cmpi eq, %arg1, %c0_i32 : i32
    %1 = arith.extui %0 : i1 to i32
    %c0_i32_0 = arith.constant 0 : i32
    %2 = arith.cmpi ne, %1, %c0_i32_0 : i32
    scf.if %2 {
      %cst_20 = arith.constant -3.40282347E+38 : f32
      %33 = vector.broadcast %cst_20 : f32 to vector<16x1xf32>
      %c0_21 = arith.constant 0 : index
      %c0_22 = arith.constant 0 : index
      %34 = vector.load %arg6[%c0_21, %c0_22] : memref<16x1xf32, #tpu.memory_space<vmem>>, vector<16x1xf32>
      tpu.vector_store %arg6[%c0_21, %c0_22], %33 {strides = array<i32>} : memref<16x1xf32, #tpu.memory_space<vmem>>, vector<16x1xf32>,
      %cst_23 = arith.constant 0.000000e+00 : f32
      %35 = vector.broadcast %cst_23 : f32 to vector<16x1xf32>
      %c0_24 = arith.constant 0 : index
      %c0_25 = arith.constant 0 : index
      %36 = vector.load %arg7[%c0_24, %c0_25] : memref<16x1xf32, #tpu.memory_space<vmem>>, vector<16x1xf32>
      tpu.vector_store %arg7[%c0_24, %c0_25], %35 {strides = array<i32>} : memref<16x1xf32, #tpu.memory_space<vmem>>, vector<16x1xf32>,
    } else {
    }
    %c0 = arith.constant 0 : index
    %c0_1 = arith.constant 0 : index
    %3 = vector.load %arg2[%c0, %c0_1] : memref<16x32xf32, #tpu.memory_space<vmem>>, vector<16x32xf32>
    %4 = arith.truncf %3 : vector<16x32xf32> to vector<16x32xbf16>
    %c0_2 = arith.constant 0 : index
    %c0_3 = arith.constant 0 : index
    %5 = vector.load %arg3[%c0_2, %c0_3] : memref<32x128xf32, #tpu.memory_space<vmem>>, vector<32x128xf32>
    %6 = arith.truncf %5 : vector<32x128xf32> to vector<32x128xbf16>
    %cst = arith.constant dense<0.000000e+00> : vector<16x128xf32>
    %7 = tpu.matmul %4, %6, %cst {dimension_numbers = #tpu.dot_dimension_numbers<[1], [0], [0], [1], [0, 0, 1, 1], [], []>} : vector<16x32xbf16>, vector<32x128xbf16>, vector<16x128xf32> -> vector<16x128xf32>
    %c0_4 = arith.constant 0 : index
    %c0_5 = arith.constant 0 : index
    %8 = vector.load %arg4[%c0_4, %c0_5] : memref<1x128xf32, #tpu.memory_space<vmem>>, vector<1x128xf32>
    %9 = vector.broadcast %8 : vector<1x128xf32> to vector<16x128xf32>
    %10 = arith.addf %7, %9 : vector<16x128xf32>
    %c0_6 = arith.constant 0 : index
    %c0_7 = arith.constant 0 : index
    %11 = vector.load %arg6[%c0_6, %c0_7] : memref<16x1xf32, #tpu.memory_space<vmem>>, vector<16x1xf32>
    %cst_8 = arith.constant dense<0xFF800000> : vector<16xf32>
    %12 = vector.multi_reduction <maximumf>, %10, %cst_8 [1] : vector<16x128xf32> to vector<16xf32>
    %13 = vector.shape_cast %12 : vector<16xf32> to vector<16x1xf32>
    %14 = arith.maximumf %11, %13 : vector<16x1xf32>
    %c0_9 = arith.constant 0 : index
    %c0_10 = arith.constant 0 : index
    %15 = vector.load %arg7[%c0_9, %c0_10] : memref<16x1xf32, #tpu.memory_space<vmem>>, vector<16x1xf32>
    %16 = arith.subf %11, %14 : vector<16x1xf32>
    %17 = math.exp %16 : vector<16x1xf32>
    %18 = arith.mulf %15, %17 : vector<16x1xf32>
    %19 = vector.broadcast %14 : vector<16x1xf32> to vector<16x128xf32>
    %20 = arith.subf %10, %19 : vector<16x128xf32>
    %21 = math.exp %20 : vector<16x128xf32>
    %cst_11 = arith.constant dense<0.000000e+00> : vector<16xf32>
    %22 = vector.multi_reduction <add>, %21, %cst_11 [1] : vector<16x128xf32> to vector<16xf32>
    %23 = vector.shape_cast %22 : vector<16xf32> to vector<16x1xf32>
    %24 = arith.addf %18, %23 : vector<16x1xf32>
    %c0_12 = arith.constant 0 : index
    %c0_13 = arith.constant 0 : index
    %25 = vector.load %arg7[%c0_12, %c0_13] : memref<16x1xf32, #tpu.memory_space<vmem>>, vector<16x1xf32>
    tpu.vector_store %arg7[%c0_12, %c0_13], %24 {strides = array<i32>} : memref<16x1xf32, #tpu.memory_space<vmem>>, vector<16x1xf32>,
    %c0_14 = arith.constant 0 : index
    %c0_15 = arith.constant 0 : index
    %26 = vector.load %arg6[%c0_14, %c0_15] : memref<16x1xf32, #tpu.memory_space<vmem>>, vector<16x1xf32>
    tpu.vector_store %arg6[%c0_14, %c0_15], %14 {strides = array<i32>} : memref<16x1xf32, #tpu.memory_space<vmem>>, vector<16x1xf32>,
    %c0_i32_16 = arith.constant 0 : i32
    %27 = arith.cmpi eq, %arg1, %c0_i32_16 : i32
    %28 = arith.extui %27 : i1 to i32
    %c0_i32_17 = arith.constant 0 : i32
    %29 = arith.cmpi ne, %28, %c0_i32_17 : i32
    scf.if %29 {
      %c0_20 = arith.constant 0 : index
      %c0_21 = arith.constant 0 : index
      %33 = vector.load %arg5[%c0_20, %c0_21] : memref<16x128xf32, #tpu.memory_space<vmem>>, vector<16x128xf32>
      tpu.vector_store %arg5[%c0_20, %c0_21], %10 {strides = array<i32>} : memref<16x128xf32, #tpu.memory_space<vmem>>, vector<16x128xf32>,
    } else {
    }
    %c0_i32_18 = arith.constant 0 : i32
    %30 = arith.cmpi eq, %arg1, %c0_i32_18 : i32
    %31 = arith.extui %30 : i1 to i32
    %c0_i32_19 = arith.constant 0 : i32
    %32 = arith.cmpi ne, %31, %c0_i32_19 : i32
    scf.if %32 {
      %c0_20 = arith.constant 0 : index
      %c0_21 = arith.constant 0 : index
      %33 = vector.load %arg5[%c0_20, %c0_21] : memref<16x128xf32, #tpu.memory_space<vmem>>, vector<16x128xf32>
      %c0_22 = arith.constant 0 : index
      %c0_23 = arith.constant 0 : index
      %34 = vector.load %arg6[%c0_22, %c0_23] : memref<16x1xf32, #tpu.memory_space<vmem>>, vector<16x1xf32>
      %c0_24 = arith.constant 0 : index
      %c0_25 = arith.constant 0 : index
      %35 = vector.load %arg7[%c0_24, %c0_25] : memref<16x1xf32, #tpu.memory_space<vmem>>, vector<16x1xf32>
      %36 = math.log %35 : vector<16x1xf32>
      %37 = arith.addf %34, %36 : vector<16x1xf32>
      %38 = vector.broadcast %37 : vector<16x1xf32> to vector<16x128xf32>
      %39 = arith.subf %33, %38 : vector<16x128xf32>
      %c0_26 = arith.constant 0 : index
      %c0_27 = arith.constant 0 : index
      %40 = vector.load %arg5[%c0_26, %c0_27] : memref<16x128xf32, #tpu.memory_space<vmem>>, vector<16x128xf32>
      tpu.vector_store %arg5[%c0_26, %c0_27], %39 {strides = array<i32>} : memref<16x128xf32, #tpu.memory_space<vmem>>, vector<16x128xf32>,
    } else {
    }
    return
  }
  func.func @transform_0(%arg0: i32, %arg1: i32) -> (i32, i32) {
    %c0_i32 = arith.constant 0 : i32
    %c0_i32_0 = arith.constant 0 : i32
    return %arg0, %c0_i32 : i32, i32
  }
  func.func @transform_1(%arg0: i32, %arg1: i32) -> (i32, i32) {
    %c0_i32 = arith.constant 0 : i32
    %c0_i32_0 = arith.constant 0 : i32
    return %c0_i32, %arg1 : i32, i32
  }
  func.func @transform_2(%arg0: i32, %arg1: i32) -> (i32, i32) {
    %c0_i32 = arith.constant 0 : i32
    %c0_i32_0 = arith.constant 0 : i32
    return %c0_i32, %arg1 : i32, i32
  }
  func.func @transform_3(%arg0: i32, %arg1: i32) -> (i32, i32) {
    %c0_i32 = arith.constant 0 : i32
    %c0_i32_0 = arith.constant 0 : i32
    return %arg0, %c0_i32 : i32, i32
  }
}

</mosaic_0001>

<bundles_post_ra>
// kernel: _masked_log_model_call.1
= control target key start
LH: loop header
LB: loop body
LE: loop exit
PB: predicated region body
PF: predicated region fallthrough
CT: control target
= control target key end

     0   :  { %8 = vsyncpa [#allocation5], 0  ;;  %s353_s0 = inlined_call_operand.hbm [shape: f32[16,32], index: 0, kind: input, shape index: {}]   ;;  %s354_s1 = inlined_call_operand.hbm [shape: f32[32,128], index: 1, kind: input, shape index: {}]   ;;  %s355_s2 = inlined_call_operand.vmem [shape: f32[1,128], index: 2, kind: input, shape index: {}]   ;;  %s356_s3 = inlined_call_operand.hbm [shape: f32[16,128], index: 3, kind: output, shape index: {}]  }
   0x1   :  { %9 = vsyncpa [#allocation8], 0 }
   0x2   :  { %10 = vsyncpa [#allocation6], 0  ;;  %s15_s14 = sshll.u32 %s353_s0, 4  ;;  %s286_s15 = smov [#allocation4]   ;;  %s16_s14 = int_to_ptr.hbm [resolvable:$true] %s15_s14 }
   0x3   :  { %s17_s16 = sshll.u32 %s286_s15, 4  ;;  %s28_s19 = sshll.u32 %s354_s1, 4  ;;  %s18_s16 = int_to_ptr.vmem [resolvable:$true] %s17_s16  ;;  %s29_s19 = int_to_ptr.hbm [resolvable:$true] %s28_s19 }
   0x4   :  { %s287_s20 = smov 128   ;;  %s288_s21 = smov 8  }
   0x5   :  { %23 = dma.hbm_to_vmem [thread:$0]  %s16_s14, 256, %s18_s16, [#allocation5], %s287_s20, %s287_s20, %s288_s21  }
   0x6   :  { %s289_s22 = smov [#allocation7]  }
   0x7   :  { %s30_s23 = sshll.u32 %s289_s22, 4  ;;  %s31_s23 = int_to_ptr.vmem [resolvable:$true] %s30_s23 }
   0x8   :  { %36 = dma.hbm_to_vmem [thread:$0]  %s29_s19, 512, %s31_s23, [#allocation8], %s287_s20, %s287_s20, %s288_s21  }
   0x9   :  { %280 = dma.done.wait [#allocation5], 256  }
   0xa   :  { %281 = vsyncadd [#allocation5], 4294967040 }
   0xb   :  { %282 = dma.done.wait [#allocation8], 512  }
   0xc   :  { %283 = vsyncadd [#allocation8], 4294966784  ;;  %v62_v0 = vld [vmem:[#allocation7 + $0x10] sm:$0xff]  ;;  %v63_v1 = vld [vmem:[#allocation7 + $0x18] sm:$0xff]  ;;  %vm70_vm0 = vcmask 261120   ;;  %vm52_vm1 = vcmask 7168  }
   0xd   :  { %v60_v2 = vld [vmem:[#allocation7] sm:$0xff]  ;;  %v65_v3 = vpack.c.bf16 %v63_v1, %v62_v0  ;;  %v61_v4 = vld [vmem:[#allocation7 + $0x8] sm:$0xff]  ;;  %v57_v6 = vld [vmem:[#allocation4] sm:$0xff]  ;;  %v290_v9 = vmov -3.4028235e+38   ;;  %v291_v15 = vmov 0  }
   0xe   :  { %v64_v5 = vpack.c.bf16 %v61_v4, %v60_v2  ;;  %v58_v7 = vld [vmem:[#allocation4 + $0x8] sm:$0xff]  ;;  %53 = vst.msk [vmem:[#allocation2] sm:$0xff] %vm52_vm1, %v290_v9  ;;  %v195_v10 = vld [vmem:[%s355_s2] ss:$0 sm:$0xff]  ;;  %193 = vset.pattern.permute.xlu1 %v291_v15  ;;  %194 = vset.pattern.permute.xlu0 %v291_v15  ;;  %v292_v16 = vmov 0.0   ;;  %s293_s2 = smov [#allocation9]  }
   0xf   :  { %80 = vmatpush.bf16.msra.mxu0 %v65_v3  ;;  %v59_v8 = vpack.c.bf16 %v58_v7, %v57_v6  ;;  %54 = vst.msk [vmem:[#allocation2 + $0x8] sm:$0xff] %vm52_vm1, %v290_v9  ;;  %s168_s24 = sshll.u32 %s293_s2, 4  ;;  %s170_s27 = sshll.u32 %s356_s3, 4  ;;  %s169_s24 = int_to_ptr.vmem [resolvable:$true] %s168_s24  ;;  %s171_s27 = int_to_ptr.hbm [resolvable:$true] %s170_s27 }
  0x10   :  { %55 = vst.msk [vmem:[#allocation3] sm:$0xff] %vm52_vm1, %v292_v16 }
  0x11   :  { %56 = vst.msk [vmem:[#allocation3 + $0x8] sm:$0xff] %vm52_vm1, %v292_v16 }
  0x13   :  { %81 = vmatpush.bf16.msra.mxu0 %v64_v5 }
  0x15   :  { %v88_v17 = vld [vmem:[#allocation2] sm:$0xff] }
  0x16   :  { %184 = vmatmul.msk.bf16.vlgmr.msra.gmra.mxu0 %vm70_vm0, %v59_v8  ;;  %v89_v21 = vld [vmem:[#allocation2 + $0x8] sm:$0xff] }
  0x17   :  { %v96_v36 = vld [vmem:[#allocation3] sm:$0xff] }
  0x18   :  { %v97_v41 = vld [vmem:[#allocation3 + $0x8] sm:$0xff] }
  0x93   :  { %v83_v11 = vpop.f32.mrf.mxu0 }
  0x94   :  { %v331_v12 = vadd.f32 %v195_v10, %v83_v11 }
  0x96   :  { %90 = vmax.xlane.f32.xlu0 %v331_v12 }
  0x9b   :  { %v85_v13 = vpop.f32.mrf.mxu0 }
  0x9c   :  { %v334_v14 = vadd.f32 %v195_v10, %v85_v13 }
  0x9e   :  { %92 = vmax.xlane.f32.xlu0 %v334_v14 }
 0x109   :  { %v91_v18 = vpop.xlane.xlu0 %90 }
 0x10a   :  { %v94_v19 = vmax.f32 %v88_v17, %v91_v18 }
 0x10c   :  { %v98_v20 = vsub.f32 %v88_v17, %v94_v19  ;;  %131 = vst.msk [vmem:[#allocation2] sm:$0xff] %vm52_vm1, %v94_v19  ;;  %108 = vperm.xlu1 %193, %v94_v19  }
 0x10e   :  { %v100_v33 = vmul.f32 1.442695, %v98_v20 }
 0x111   :  { %v93_v22 = vpop.xlane.xlu0 %92 }
 0x112   :  { %v95_v23 = vmax.f32 %v89_v21, %v93_v22 }
 0x113   :  { %v140_v49 = vld [vmem:[#allocation2] sm:$0xff] }
 0x114   :  { %v99_v24 = vsub.f32 %v89_v21, %v95_v23  ;;  %132 = vst.msk [vmem:[#allocation2 + $0x8] sm:$0xff] %vm52_vm1, %v95_v23  ;;  %113 = vperm.xlu1 %193, %v95_v23  }
 0x116   :  { %v102_v34 = vmul.f32 1.442695, %v99_v24 }
 0x11b   :  { %v141_v53 = vld [vmem:[#allocation2 + $0x8] sm:$0xff] }
 0x17e   :  { %v109_v25 = vpop.permute.xlu1 %108 }
 0x17f   :  { %v116_v26 = vsub.f32 %v331_v12, %v109_v25 }
 0x181   :  { %v118_v27 = vmul.f32 1.442695, %v116_v26 }
 0x183   :  { %196 = vpow2.f32 %v118_v27 }
 0x186   :  { %v114_v28 = vpop.permute.xlu1 %113 }
 0x187   :  { %v117_v29 = vsub.f32 %v334_v14, %v114_v28 }
 0x189   :  { %v197_v30 = vpop.eup %196  ;;  %v120_v31 = vmul.f32 1.442695, %v117_v29 }
 0x18a   :  { %122 = vadd.xlane.f32.xlu2 %v197_v30 }
 0x18b   :  { %198 = vpow2.f32 %v120_v31 }
 0x18c   :  { %200 = vpow2.f32 %v100_v33 }
 0x18d   :  { %202 = vpow2.f32 %v102_v34 }
 0x191   :  { %v199_v32 = vpop.eup %198 }
 0x192   :  { %124 = vadd.xlane.f32.xlu2 %v199_v32  ;;  %v201_v35 = vpop.eup %200 }
 0x193   :  { %v104_v37 = vmul.f32 %v201_v35, %v96_v36  ;;  %v203_v40 = vpop.eup %202 }
 0x194   :  { %v105_v42 = vmul.f32 %v203_v40, %v97_v41 }
 0x1fd   :  { %v123_v38 = vpop.xlane.xlu2 %122 }
 0x1fe   :  { %v126_v39 = vadd.f32 %v123_v38, %v104_v37 }
 0x200   :  { %129 = vst.msk [vmem:[#allocation3] sm:$0xff] %vm52_vm1, %v126_v39 }
 0x205   :  { %v125_v43 = vpop.xlane.xlu2 %124 }
 0x206   :  { %v127_v44 = vadd.f32 %v125_v43, %v105_v42 }
 0x207   :  { %v142_v45 = vld [vmem:[#allocation3] sm:$0xff] }
 0x208   :  { %130 = vst.msk [vmem:[#allocation3 + $0x8] sm:$0xff] %vm52_vm1, %v127_v44  ;;  %204 = vlog2.f32 %v142_v45 }
 0x20e   :  { %v205_v46 = vpop.eup %204 }
 0x20f   :  { %v145_v47 = vmul.f32 0.6931472, %v205_v46  ;;  %v143_v48 = vld [vmem:[#allocation3 + $0x8] sm:$0xff] }
 0x210   :  { %206 = vlog2.f32 %v143_v48 }
 0x211   :  { %v148_v50 = vadd.f32 %v145_v47, %v140_v49 }
 0x213   :  { %152 = vperm.xlu0 %194, %v148_v50  }
 0x216   :  { %v207_v51 = vpop.eup %206 }
 0x217   :  { %v147_v52 = vmul.f32 0.6931472, %v207_v51 }
 0x219   :  { %v149_v54 = vadd.f32 %v147_v52, %v141_v53 }
 0x21b   :  { %157 = vperm.xlu1 %193, %v149_v54  }
 0x285   :  { %v153_v55 = vpop.permute.xlu0 %152 }
 0x286   :  { %v160_v56 = vsub.f32 %v331_v12, %v153_v55 }
 0x288   :  { %162 = vst [vmem:[#allocation9] sm:$0xff] %v160_v56 }
 0x28d   :  { %v158_v57 = vpop.permute.xlu1 %157 }
 0x28e   :  { %v161_v58 = vsub.f32 %v334_v14, %v158_v57 }
 0x290   :  { %163 = vst [vmem:[#allocation9 + $0x8] sm:$0xff] %v161_v58 }
 0x291   :  { %176 = dma.vmem_to_hbm [thread:$0]  %s169_s24, 256, %s171_s27, [#allocation6], %s287_s20, %s287_s20, %s288_s21  }
 0x292   :  { %284 = dma.done.wait [#allocation6], 256  }
 0x293   :  { %285 = vsyncadd [#allocation6], 4294967040 }
 0x294   :  { %181 = vsyncpa [#allocation5], 1 }
 0x295   :  { %182 = vsyncpa [#allocation8], 1 }
 0x296   :  { %183 = vsyncpa [#allocation6], 1 }

</bundles_post_ra>
